<compile_context>
chip_gen: v7x
topology: tpu7x:2x2x1
jax: 0.10.0
libtpu: 0.0.40
codegen_flags: <defaults>
</compile_context>

<pallas_src>
import jax
import jax.numpy as jnp
from jax.experimental import pallas as pl
from jax.experimental.pallas import tpu as pltpu

LANE = 128     # lane width: last-dim padding target (full, unmasked vector ops)
SUBLANE = 8    # sublane width: batch-dim padding target


def _round_up(x, m):
    return ((x + m - 1) // m) * m


def _pad2d(x, rows, cols):
    r, c = x.shape
    return jnp.pad(x, ((0, rows - r), (0, cols - c)))


def decoder_kernel(x_ref, w1_ref, b1_ref, w2_ref, b2_ref, o_ref):
    # fc1: x @ W1 + b1 (f32 accumulate on the MXU); bias-add + ReLU ride in
    # idle VPU slots on the f32 accumulator (important on v5e: no bf16 VPU).
    h = jnp.dot(x_ref[...], w1_ref[...], preferred_element_type=jnp.float32)
    h = jnp.maximum(h + b1_ref[...], 0.0)
    # fc2: h @ W2 + b2 (cast back to the bf16 weight dtype for the MXU).
    out = jnp.dot(h.astype(w2_ref.dtype), w2_ref[...],
                  preferred_element_type=jnp.float32)
    o_ref[...] = (out + b2_ref[...]).astype(o_ref.dtype)


def prepare_decoder_params(params, input_dim, latent_dim, weight_dtype=jnp.bfloat16):
    """One-time preprocessing of PyTorch nn.Linear-layout weights.

    fc1_w [H, I+L], fc1_b [H], fc2_w [I, H], fc2_b [I]  ->
      w1 [Kp, Hp]  (Kp = round_up(I+L, 128); single matrix, concat NOT split)
      b1 [1, Hp]   (f32)
      w2 [Hp, Ip]
      b2 [1, Ip]   (f32)
    Zero padding is mathematically inert; weights are cast to bf16 (MXU-native).
    """
    hidden_dim = params["fc1_w"].shape[0]
    kp = _round_up(input_dim + latent_dim, LANE)
    hp = _round_up(hidden_dim, LANE)
    ip = _round_up(input_dim, LANE)
    prep = {
        "w1": _pad2d(params["fc1_w"].T, kp, hp).astype(weight_dtype),
        "b1": _pad2d(params["fc1_b"].reshape(1, hidden_dim), 1, hp).astype(jnp.float32),
        "w2": _pad2d(params["fc2_w"].T, hp, ip).astype(weight_dtype),
        "b2": _pad2d(params["fc2_b"].reshape(1, input_dim), 1, ip).astype(jnp.float32),
    }
    # TODO(synk): on v7x, weights could additionally be stored as fp8 (f32
    # accumulate) to halve weight VMEM/HBM again; not portable to v5e/v6e.
    return prep


def _pick_batch_tile(B):
    """Batch (M) tile.

    - Tiny B: one tile (splitting only adds per-step overhead).
    - B >= 16: at least 2 tiles so the "parallel" grid axis shards across
      v7x's two TensorCores; cap at 512 rows (measured ~85%+ of HBM roofline
      on v6e, amortizes the ~0.35us/step overhead, fills the 256-wide MXU).
    """
    max_tb = 512
    if B < 16:
        return _round_up(max(B, 1), SUBLANE)
    tb = _round_up(-(-B // 2), SUBLANE)
    return min(tb, max_tb)


def make_decoder_forward(single_buffer_weights=True):
    weight_mode = pl.Buffered(1) if single_buffer_weights else None

    @jax.jit
    def decoder_forward(gti, z, w1, b1, w2, b2):
        B, input_dim = gti.shape
        latent_dim = z.shape[1]
        kp, hp = w1.shape
        ip = w2.shape[1]
        assert kp >= input_dim + latent_dim and ip >= input_dim

        tb = _pick_batch_tile(B)
        bp = _round_up(B, tb)

        # Activation prep (concat + pad + bf16 cast) fuses with the kernel
        # dispatch under jit; padded rows/cols are inert and sliced off below.
        act_dtype = w1.dtype
        x = jnp.concatenate([gti, z], axis=-1)
        x_p = _pad2d(x, bp, kp).astype(act_dtype)

        # Explicit VMEM budget: double-buffered activation tiles + weights
        # (single-buffered when Buffered(1) is honored). Cap at the v7x
        # physical 64 MiB so the same call works on all three generations.
        act_bytes = jnp.dtype(act_dtype).itemsize
        w_bytes = w1.dtype.itemsize
        out_bytes = jnp.dtype(gti.dtype).itemsize
        wbuf = 1 if single_buffer_weights else 2
        est = (2 * tb * kp * act_bytes
               + 2 * tb * ip * out_bytes
               + wbuf * ((kp * hp + hp * ip) * w_bytes + (hp + ip) * 4))
        vmem_limit = int(min(max(2 * est, 4 * 1024 * 1024), 64 * 1024 * 1024))

        # TODO(synk): if (W1 + W2) residency ever approaches the 64 MiB v7x
        # VMEM budget, add a hidden-dim grid axis marked "arbitrary" with an
        # f32 VMEM scratch accumulator (pl.when init/finalize) instead of
        # shrinking the batch or output-N tile.
        out_p = pl.pallas_call(
            decoder_kernel,
            out_shape=jax.ShapeDtypeStruct((bp, ip), gti.dtype),
            grid=(bp // tb,),
            in_specs=[
                pl.BlockSpec((tb, kp), lambda i: (i, 0)),                            # x tile
                pl.BlockSpec((kp, hp), lambda i: (0, 0), pipeline_mode=weight_mode),  # W1 (resident)
                pl.BlockSpec((1, hp), lambda i: (0, 0), pipeline_mode=weight_mode),   # b1
                pl.BlockSpec((hp, ip), lambda i: (0, 0), pipeline_mode=weight_mode),  # W2 (resident)
                pl.BlockSpec((1, ip), lambda i: (0, 0), pipeline_mode=weight_mode),   # b2
            ],
            out_specs=pl.BlockSpec((tb, ip), lambda i: (i, 0)),
            compiler_params=pltpu.CompilerParams(
                dimension_semantics=("parallel",),
                vmem_limit_bytes=vmem_limit),
        )(x_p, w1, b1, w2, b2)

        return out_p[:B, :input_dim]

    return decoder_forward


def init_params(key, input_dim, latent_dim, hidden_dim, dtype=jnp.float32):
    k1, k2, k3, k4 = jax.random.split(key, 4)
    # Deterministic synthetic init (roughly like PyTorch's uniform fan-in init).
    s1 = 1.0 / jnp.sqrt(input_dim + latent_dim)
    s2 = 1.0 / jnp.sqrt(hidden_dim)
    return {
        "fc1_w": jax.random.uniform(k1, (hidden_dim, input_dim + latent_dim), dtype, -s1, s1),
        "fc1_b": jax.random.uniform(k2, (hidden_dim,), dtype, -s1, s1),
        "fc2_w": jax.random.uniform(k3, (input_dim, hidden_dim), dtype, -s2, s2),
        "fc2_b": jax.random.uniform(k4, (input_dim,), dtype, -s2, s2),
    }


def decoder_reference(gti, z, params):
    x = jnp.concatenate([gti, z], axis=-1)
    h = jax.nn.relu(x @ params["fc1_w"].T + params["fc1_b"])
    return h @ params["fc2_w"].T + params["fc2_b"]


if __name__ == "__main__":
    batch, input_dim, latent_dim, hidden_dim = 8, 16, 8, 32

    key = jax.random.PRNGKey(0)
    kparam, kg, kz = jax.random.split(key, 3)
    params = init_params(kparam, input_dim, latent_dim, hidden_dim)
    gti = jax.random.normal(kg, (batch, input_dim), jnp.float32)
    z = jax.random.normal(kz, (batch, latent_dim), jnp.float32)

    # One-time weight preprocessing (hoisted out of the forward path).
    prep = prepare_decoder_params(params, input_dim, latent_dim)
    prep = jax.tree_util.tree_map(jax.block_until_ready, prep)
    w1, b1, w2, b2 = prep["w1"], prep["b1"], prep["w2"], prep["b2"]

    try:
        decoder_forward = make_decoder_forward(single_buffer_weights=True)
        out = jax.block_until_ready(decoder_forward(gti, z, w1, b1, w2, b2))
    except Exception:
        # Fallback: some jax/Mosaic builds reject Buffered(1) on input specs;
        # semantics are identical, weights are just double-buffered.
        decoder_forward = make_decoder_forward(single_buffer_weights=False)
        out = jax.block_until_ready(decoder_forward(gti, z, w1, b1, w2, b2))

    ref = decoder_reference(gti, z, params)
    assert out.shape == (batch, input_dim)
    # bf16 weights/activations vs f32 reference -> loosened tolerance.
    assert jnp.allclose(out, ref, atol=5e-2, rtol=5e-2), \
        float(jnp.max(jnp.abs(out - ref)))

    print("KERNEL_OK")
</pallas_src>

<mosaic_0001>
module attributes {stable_mosaic.version = 11 : i64} {
  func.func @decoder_kernel(%arg0: i32, %arg1: memref<8x128xbf16, #tpu.memory_space<vmem>>, %arg2: memref<128x128xbf16, #tpu.memory_space<vmem>>, %arg3: memref<1x128xf32, #tpu.memory_space<vmem>>, %arg4: memref<128x128xbf16, #tpu.memory_space<vmem>>, %arg5: memref<1x128xf32, #tpu.memory_space<vmem>>, %arg6: memref<8x128xf32, #tpu.memory_space<vmem>>) attributes {dimension_semantics = [#tpu.dimension_semantics<parallel>], iteration_bounds = array<i64: 1>, scalar_prefetch = 0 : i64, scratch_operands = 0 : i64, tpu.core_type = #tpu.core_type<tc>, window_params = [{transform_indices = @transform_0, window_bounds = array<i64: 8, 128>}, {pipeline_mode = #tpu.pipeline_mode<synchronous>, transform_indices = @transform_1, window_bounds = array<i64: 128, 128>}, {pipeline_mode = #tpu.pipeline_mode<synchronous>, transform_indices = @transform_2, window_bounds = array<i64: 1, 128>}, {pipeline_mode = #tpu.pipeline_mode<synchronous>, transform_indices = @transform_3, window_bounds = array<i64: 128, 128>}, {pipeline_mode = #tpu.pipeline_mode<synchronous>, transform_indices = @transform_4, window_bounds = array<i64: 1, 128>}, {transform_indices = @transform_5, window_bounds = array<i64: 8, 128>}]} {
    %c0 = arith.constant 0 : index
    %c0_0 = arith.constant 0 : index
    %0 = vector.load %arg1[%c0, %c0_0] : memref<8x128xbf16, #tpu.memory_space<vmem>>, vector<8x128xbf16>
    %c0_1 = arith.constant 0 : index
    %c0_2 = arith.constant 0 : index
    %1 = vector.load %arg2[%c0_1, %c0_2] : memref<128x128xbf16, #tpu.memory_space<vmem>>, vector<128x128xbf16>
    %cst = arith.constant dense<0.000000e+00> : vector<8x128xf32>
    %2 = tpu.matmul %0, %1, %cst {dimension_numbers = #tpu.dot_dimension_numbers<[1], [0], [0], [1], [0, 0, 1, 1], [], []>} : vector<8x128xbf16>, vector<128x128xbf16>, vector<8x128xf32> -> vector<8x128xf32>
    %c0_3 = arith.constant 0 : index
    %c0_4 = arith.constant 0 : index
    %3 = vector.load %arg3[%c0_3, %c0_4] : memref<1x128xf32, #tpu.memory_space<vmem>>, vector<1x128xf32>
    %4 = vector.broadcast %3 : vector<1x128xf32> to vector<8x128xf32>
    %5 = arith.addf %2, %4 : vector<8x128xf32>
    %cst_5 = arith.constant 0.000000e+00 : f32
    %6 = vector.broadcast %cst_5 : f32 to vector<8x128xf32>
    %7 = arith.maximumf %5, %6 : vector<8x128xf32>
    %8 = arith.truncf %7 : vector<8x128xf32> to vector<8x128xbf16>
    %c0_6 = arith.constant 0 : index
    %c0_7 = arith.constant 0 : index
    %9 = vector.load %arg4[%c0_6, %c0_7] : memref<128x128xbf16, #tpu.memory_space<vmem>>, vector<128x128xbf16>
    %cst_8 = arith.constant dense<0.000000e+00> : vector<8x128xf32>
    %10 = tpu.matmul %8, %9, %cst_8 {dimension_numbers = #tpu.dot_dimension_numbers<[1], [0], [0], [1], [0, 0, 1, 1], [], []>} : vector<8x128xbf16>, vector<128x128xbf16>, vector<8x128xf32> -> vector<8x128xf32>
    %c0_9 = arith.constant 0 : index
    %c0_10 = arith.constant 0 : index
    %11 = vector.load %arg5[%c0_9, %c0_10] : memref<1x128xf32, #tpu.memory_space<vmem>>, vector<1x128xf32>
    %12 = vector.broadcast %11 : vector<1x128xf32> to vector<8x128xf32>
    %13 = arith.addf %10, %12 : vector<8x128xf32>
    %c0_11 = arith.constant 0 : index
    %c0_12 = arith.constant 0 : index
    %14 = vector.load %arg6[%c0_11, %c0_12] : memref<8x128xf32, #tpu.memory_space<vmem>>, vector<8x128xf32>
    tpu.vector_store %arg6[%c0_11, %c0_12], %13 {strides = array<i32>} : memref<8x128xf32, #tpu.memory_space<vmem>>, vector<8x128xf32>,
    return
  }
  func.func @transform_0(%arg0: i32) -> (i32, i32) {
    %c0_i32 = arith.constant 0 : i32
    %c0_i32_0 = arith.constant 0 : i32
    return %arg0, %c0_i32 : i32, i32
  }
  func.func @transform_1(%arg0: i32) -> (i32, i32) {
    %c0_i32 = arith.constant 0 : i32
    %c0_i32_0 = arith.constant 0 : i32
    %c0_i32_1 = arith.constant 0 : i32
    return %c0_i32, %c0_i32_0 : i32, i32
  }
  func.func @transform_2(%arg0: i32) -> (i32, i32) {
    %c0_i32 = arith.constant 0 : i32
    %c0_i32_0 = arith.constant 0 : i32
    %c0_i32_1 = arith.constant 0 : i32
    return %c0_i32, %c0_i32_0 : i32, i32
  }
  func.func @transform_3(%arg0: i32) -> (i32, i32) {
    %c0_i32 = arith.constant 0 : i32
    %c0_i32_0 = arith.constant 0 : i32
    %c0_i32_1 = arith.constant 0 : i32
    return %c0_i32, %c0_i32_0 : i32, i32
  }
  func.func @transform_4(%arg0: i32) -> (i32, i32) {
    %c0_i32 = arith.constant 0 : i32
    %c0_i32_0 = arith.constant 0 : i32
    %c0_i32_1 = arith.constant 0 : i32
    return %c0_i32, %c0_i32_0 : i32, i32
  }
  func.func @transform_5(%arg0: i32) -> (i32, i32) {
    %c0_i32 = arith.constant 0 : i32
    %c0_i32_0 = arith.constant 0 : i32
    return %arg0, %c0_i32 : i32, i32
  }
}

module attributes {stable_mosaic.version = 11 : i64} {
  func.func @decoder_kernel(%arg0: i32, %arg1: memref<8x128xbf16, #tpu.memory_space<vmem>>, %arg2: memref<128x128xbf16, #tpu.memory_space<vmem>>, %arg3: memref<1x128xf32, #tpu.memory_space<vmem>>, %arg4: memref<128x128xbf16, #tpu.memory_space<vmem>>, %arg5: memref<1x128xf32, #tpu.memory_space<vmem>>, %arg6: memref<8x128xf32, #tpu.memory_space<vmem>>) attributes {dimension_semantics = [#tpu.dimension_semantics<parallel>], iteration_bounds = array<i64: 1>, scalar_prefetch = 0 : i64, scratch_operands = 0 : i64, tpu.core_type = #tpu.core_type<tc>, window_params = [{transform_indices = @transform_0, window_bounds = array<i64: 8, 128>}, {pipeline_mode = #tpu.pipeline_mode<synchronous>, transform_indices = @transform_1, window_bounds = array<i64: 128, 128>}, {pipeline_mode = #tpu.pipeline_mode<synchronous>, transform_indices = @transform_2, window_bounds = array<i64: 1, 128>}, {pipeline_mode = #tpu.pipeline_mode<synchronous>, transform_indices = @transform_3, window_bounds = array<i64: 128, 128>}, {pipeline_mode = #tpu.pipeline_mode<synchronous>, transform_indices = @transform_4, window_bounds = array<i64: 1, 128>}, {transform_indices = @transform_5, window_bounds = array<i64: 8, 128>}]} {
    %c0 = arith.constant 0 : index
    %c0_0 = arith.constant 0 : index
    %0 = vector.load %arg1[%c0, %c0_0] : memref<8x128xbf16, #tpu.memory_space<vmem>>, vector<8x128xbf16>
    %c0_1 = arith.constant 0 : index
    %c0_2 = arith.constant 0 : index
    %1 = vector.load %arg2[%c0_1, %c0_2] : memref<128x128xbf16, #tpu.memory_space<vmem>>, vector<128x128xbf16>
    %cst = arith.constant dense<0.000000e+00> : vector<8x128xf32>
    %2 = tpu.matmul %0, %1, %cst {dimension_numbers = #tpu.dot_dimension_numbers<[1], [0], [0], [1], [0, 0, 1, 1], [], []>} : vector<8x128xbf16>, vector<128x128xbf16>, vector<8x128xf32> -> vector<8x128xf32>
    %c0_3 = arith.constant 0 : index
    %c0_4 = arith.constant 0 : index
    %3 = vector.load %arg3[%c0_3, %c0_4] : memref<1x128xf32, #tpu.memory_space<vmem>>, vector<1x128xf32>
    %4 = vector.broadcast %3 : vector<1x128xf32> to vector<8x128xf32>
    %5 = arith.addf %2, %4 : vector<8x128xf32>
    %cst_5 = arith.constant 0.000000e+00 : f32
    %6 = vector.broadcast %cst_5 : f32 to vector<8x128xf32>
    %7 = arith.maximumf %5, %6 : vector<8x128xf32>
    %8 = arith.truncf %7 : vector<8x128xf32> to vector<8x128xbf16>
    %c0_6 = arith.constant 0 : index
    %c0_7 = arith.constant 0 : index
    %9 = vector.load %arg4[%c0_6, %c0_7] : memref<128x128xbf16, #tpu.memory_space<vmem>>, vector<128x128xbf16>
    %cst_8 = arith.constant dense<0.000000e+00> : vector<8x128xf32>
    %10 = tpu.matmul %8, %9, %cst_8 {dimension_numbers = #tpu.dot_dimension_numbers<[1], [0], [0], [1], [0, 0, 1, 1], [], []>} : vector<8x128xbf16>, vector<128x128xbf16>, vector<8x128xf32> -> vector<8x128xf32>
    %c0_9 = arith.constant 0 : index
    %c0_10 = arith.constant 0 : index
    %11 = vector.load %arg5[%c0_9, %c0_10] : memref<1x128xf32, #tpu.memory_space<vmem>>, vector<1x128xf32>
    %12 = vector.broadcast %11 : vector<1x128xf32> to vector<8x128xf32>
    %13 = arith.addf %10, %12 : vector<8x128xf32>
    %c0_11 = arith.constant 0 : index
    %c0_12 = arith.constant 0 : index
    %14 = vector.load %arg6[%c0_11, %c0_12] : memref<8x128xf32, #tpu.memory_space<vmem>>, vector<8x128xf32>
    tpu.vector_store %arg6[%c0_11, %c0_12], %13 {strides = array<i32>} : memref<8x128xf32, #tpu.memory_space<vmem>>, vector<8x128xf32>,
    return
  }
  func.func @transform_0(%arg0: i32) -> (i32, i32) {
    %c0_i32 = arith.constant 0 : i32
    %c0_i32_0 = arith.constant 0 : i32
    return %arg0, %c0_i32 : i32, i32
  }
  func.func @transform_1(%arg0: i32) -> (i32, i32) {
    %c0_i32 = arith.constant 0 : i32
    %c0_i32_0 = arith.constant 0 : i32
    %c0_i32_1 = arith.constant 0 : i32
    return %c0_i32, %c0_i32_0 : i32, i32
  }
  func.func @transform_2(%arg0: i32) -> (i32, i32) {
    %c0_i32 = arith.constant 0 : i32
    %c0_i32_0 = arith.constant 0 : i32
    %c0_i32_1 = arith.constant 0 : i32
    return %c0_i32, %c0_i32_0 : i32, i32
  }
  func.func @transform_3(%arg0: i32) -> (i32, i32) {
    %c0_i32 = arith.constant 0 : i32
    %c0_i32_0 = arith.constant 0 : i32
    %c0_i32_1 = arith.constant 0 : i32
    return %c0_i32, %c0_i32_0 : i32, i32
  }
  func.func @transform_4(%arg0: i32) -> (i32, i32) {
    %c0_i32 = arith.constant 0 : i32
    %c0_i32_0 = arith.constant 0 : i32
    %c0_i32_1 = arith.constant 0 : i32
    return %c0_i32, %c0_i32_0 : i32, i32
  }
  func.func @transform_5(%arg0: i32) -> (i32, i32) {
    %c0_i32 = arith.constant 0 : i32
    %c0_i32_0 = arith.constant 0 : i32
    return %arg0, %c0_i32 : i32, i32
  }
}

</mosaic_0001>

<bundles_post_ra>
// kernel: decoder_forward.1
= control target key start
LH: loop header
LB: loop body
LE: loop exit
PB: predicated region body
PF: predicated region fallthrough
CT: control target
= control target key end

     0   :  { %10 = vsyncpa [#allocation3], 0  ;;  %s545_s0 = inlined_call_operand.vmem [shape: bf16[8,128], index: 0, kind: input, shape index: {}]   ;;  %s546_s1 = inlined_call_operand.hbm [shape: bf16[128,128], index: 1, kind: input, shape index: {}]   ;;  %s547_s2 = inlined_call_operand.vmem [shape: f32[1,128], index: 2, kind: input, shape index: {}]   ;;  %s548_s3 = inlined_call_operand.hbm [shape: bf16[128,128], index: 3, kind: input, shape index: {}]   ;;  %s549_s4 = inlined_call_operand.vmem [shape: f32[1,128], index: 4, kind: input, shape index: {}]   ;;  %s550_s5 = inlined_call_operand.hbm [shape: f32[8,128], index: 5, kind: output, shape index: {}]  }
   0x1   :  { %11 = vsyncpa [#allocation6], 0 }
   0x2   :  { %12 = vsyncpa [#allocation4], 0  ;;  %s463_s18 = smov [#allocation2]   ;;  %s391_s22 = scalar_lea.hbm %s546_s1, 1024 }
   0x3   :  { %s20_s19 = sshll.u32 %s463_s18, 4  ;;  %p392_p0 = scmp.ne.s32.totalorder %s546_s1, %s391_s22  ;;  %s21_s19 = int_to_ptr.vmem [resolvable:$true] %s20_s19 }
   0x4   :  { %p395_p1 = scmp.lt.u32.totalorder %s391_s22, %s546_s1 }
   0x6   :  { %p397_p2 = pnand %p395_p1, %p392_p0 }
   0x8   :  { %400 = shalt.err (!%p397_p2)
}
   0x9   :  { %s401_s27 = scalar_lea.vmem %s21_s19, 1024  ;;  %p406_p4 = scmp.lt.s32.totalorder %s21_s19, %s21_s19 }
   0xa   :  { %p402_p3 = scmp.ne.s32.totalorder %s21_s19, %s401_s27  ;;  %p407_p5 = scmp.lt.s32.totalorder %s401_s27, %s401_s27 }
   0xc   :  { %p408_p6 = por %p407_p5, %p406_p4 }
   0xe   :  { %p409_p7 = pnand %p408_p6, %p402_p3 }
  0x10   :  { %412 = shalt.err (!%p409_p7)
}
  0x11   :  { %s464_s28 = smov 64   ;;  %s465_s29 = smov 4  }
  0x12   :  { %26 = dma.hbm_to_vmem [thread:$0]  %s546_s1, 1024, %s21_s19, [#allocation3], %s464_s28, %s464_s28, %s465_s29  }
  0x13   :  { %s466_s7 = smov [#allocation5]   ;;  %s413_s11 = scalar_lea.hbm %s548_s3, 1024 }
  0x14   :  { %s34_s8 = sshll.u32 %s466_s7, 4  ;;  %p414_p8 = scmp.ne.s32.totalorder %s548_s3, %s413_s11  ;;  %s35_s8 = int_to_ptr.vmem [resolvable:$true] %s34_s8 }
  0x15   :  { %p417_p9 = scmp.lt.u32.totalorder %s413_s11, %s548_s3 }
  0x17   :  { %p419_p10 = pnand %p417_p9, %p414_p8 }
  0x19   :  { %422 = shalt.err (!%p419_p10)
}
  0x1a   :  { %s423_s16 = scalar_lea.vmem %s35_s8, 1024  ;;  %p428_p12 = scmp.lt.s32.totalorder %s35_s8, %s35_s8 }
  0x1b   :  { %p424_p11 = scmp.ne.s32.totalorder %s35_s8, %s423_s16  ;;  %p429_p13 = scmp.lt.s32.totalorder %s423_s16, %s423_s16 }
  0x1d   :  { %p430_p0 = por %p429_p13, %p428_p12 }
  0x1f   :  { %p431_p1 = pnand %p430_p0, %p424_p11 }
  0x21   :  { %434 = shalt.err (!%p431_p1)
}
  0x22   :  { %40 = dma.hbm_to_vmem [thread:$0]  %s548_s3, 1024, %s35_s8, [#allocation6], %s464_s28, %s464_s28, %s465_s29  }
  0x23   :  { %457 = dma.done.wait [#allocation3], 1024  }
  0x24   :  { %458 = vsyncadd [#allocation3], 4294966272 }
  0x25   :  { %459 = dma.done.wait [#allocation6], 1024  }
  0x26   :  { %460 = vsyncadd [#allocation6], 4294966272  ;;  %v467_v0 = vmov 0.0   ;;  %vm468_vm0 = vmmov 0   ;;  %v375_v1 = vld [vmem:[#allocation2] sm:$0xff]   ;;  %v376_v2 = vld [vmem:[#allocation2 + $0x8] sm:$0xff]  }
  0x27   :  { %328 = vmatprep.subr.bf16.mxu0 %v467_v0  ;;  %344 = vmatprep.mubr.msk.bf16.mxu0 %vm468_vm0, %v467_v0  ;;  %v377_v3 = vld [vmem:[#allocation2 + $0x10] sm:$0xff]   ;;  %v383_v4 = vld [vmem:[#allocation5] sm:$0xff]   ;;  %v378_v5 = vld [vmem:[#allocation2 + $0x18] sm:$0xff]   ;;  %s469_s22 = smov [#allocation7]  }
  0x28   :  { %348 = vmatprep.subr.bf16.mxu1 %v467_v0  ;;  %364 = vmatprep.mubr.msk.bf16.mxu1 %vm468_vm0, %v467_v0  ;;  %v384_v6 = vld [vmem:[#allocation5 + $0x8] sm:$0xff]   ;;  %v379_v7 = vld [vmem:[#allocation2 + $0x20] sm:$0xff]   ;;  %v385_v8 = vld [vmem:[#allocation5 + $0x10] sm:$0xff]   ;;  %s282_s23 = sshll.u32 %s469_s22, 4  ;;  %s283_s23 = int_to_ptr.vmem [resolvable:$true] %s282_s23 }
  0x29   :  { %329 = vmatpush3.bf16.msra.mxu0 %v375_v1  ;;  %349 = vmatpush3.bf16.msra.mxu1 %v383_v4  ;;  %v380_v9 = vld [vmem:[#allocation2 + $0x28] sm:$0xff]   ;;  %v386_v10 = vld [vmem:[#allocation5 + $0x18] sm:$0xff]   ;;  %v381_v11 = vld [vmem:[#allocation2 + $0x30] sm:$0xff]   ;;  %p440_p3 = scmp.lt.s32.totalorder %s283_s23, %s283_s23 }
  0x2a   :  { %330 = vmatprep.subr.bf16.mxu0 %v467_v0  ;;  %350 = vmatprep.subr.bf16.mxu1 %v467_v0  ;;  %v387_v12 = vld [vmem:[#allocation5 + $0x20] sm:$0xff]   ;;  %v382_v13 = vld [vmem:[#allocation2 + $0x38] sm:$0xff]   ;;  %v388_v14 = vld [vmem:[#allocation5 + $0x28] sm:$0xff]  }
  0x2b   :  { %v50_v15 = vld [vmem:[%s545_s0] sm:$0xf]  ;;  %v389_v16 = vld [vmem:[#allocation5 + $0x30] sm:$0xff]  }
  0x2c   :  { %v390_v17 = vld [vmem:[#allocation5 + $0x38] sm:$0xff]  }
  0x2d   :  { %331 = vmatpush3.bf16.msra.mxu0 %v376_v2  ;;  %351 = vmatpush3.bf16.msra.mxu1 %v384_v6  ;;  %v292_v18 = vld [vmem:[%s547_s2] ss:$0 sm:$0xff]  ;;  %s435_s2 = scalar_lea.vmem %s283_s23, 128 }
  0x2e   :  { %332 = vmatprep.subr.bf16.mxu0 %v467_v0  ;;  %352 = vmatprep.subr.bf16.mxu1 %v467_v0  ;;  %v301_v26 = vld [vmem:[%s549_s4] ss:$0 sm:$0xff]  ;;  %p436_p2 = scmp.ne.s32.totalorder %s283_s23, %s435_s2  ;;  %p441_p4 = scmp.lt.s32.totalorder %s435_s2, %s435_s2 }
  0x30   :  { %p442_p5 = por %p441_p4, %p440_p3 }
  0x31   :  { %333 = vmatpush3.bf16.msra.mxu0 %v377_v3  ;;  %353 = vmatpush3.bf16.msra.mxu1 %v385_v8 }
  0x32   :  { %334 = vmatprep.subr.bf16.mxu0 %v467_v0  ;;  %354 = vmatprep.subr.bf16.mxu1 %v467_v0  ;;  %p443_p6 = pnand %p442_p5, %p436_p2 }
  0x35   :  { %335 = vmatpush3.bf16.msra.mxu0 %v378_v5  ;;  %355 = vmatpush3.bf16.msra.mxu1 %v386_v10 }
  0x36   :  { %336 = vmatprep.subr.bf16.mxu0 %v467_v0  ;;  %356 = vmatprep.subr.bf16.mxu1 %v467_v0 }
  0x39   :  { %337 = vmatpush3.bf16.msra.mxu0 %v379_v7  ;;  %357 = vmatpush3.bf16.msra.mxu1 %v387_v12 }
  0x3a   :  { %338 = vmatprep.subr.bf16.mxu0 %v467_v0  ;;  %358 = vmatprep.subr.bf16.mxu1 %v467_v0 }
  0x3d   :  { %339 = vmatpush3.bf16.msra.mxu0 %v380_v9  ;;  %359 = vmatpush3.bf16.msra.mxu1 %v388_v14 }
  0x3e   :  { %340 = vmatprep.subr.bf16.mxu0 %v467_v0  ;;  %360 = vmatprep.subr.bf16.mxu1 %v467_v0 }
  0x41   :  { %341 = vmatpush3.bf16.msra.mxu0 %v381_v11  ;;  %361 = vmatpush3.bf16.msra.mxu1 %v389_v16 }
  0x42   :  { %342 = vmatprep.subr.bf16.mxu0 %v467_v0  ;;  %362 = vmatprep.subr.bf16.mxu1 %v467_v0 }
  0x45   :  { %343 = vmatpush3.bf16.msra.mxu0 %v382_v13  ;;  %363 = vmatpush3.bf16.msra.mxu1 %v390_v17 }
  0x48   :  { %345 = vmatmul.mubr.bf16.vlgmr.msra.gmra.mrb[0].mxu0 %v50_v15 }
 0x11b   :  { %v156_v19 = vpop.f32.mrb[0].mxu0 }
 0x11c   :  { %v157_v20 = vadd.f32 %v292_v18, %v156_v19  ;;  %v346_v21 = vpop.f32.mrb[1].mxu0 }
 0x11d   :  { %v159_v22 = vpop.f32.mrb[2].mxu0 }
 0x11e   :  { %v162_v23 = vmax.f32 %v157_v20, 0.0  ;;  %v347_v24 = vpop.f32.mrb[3].mxu0 }
 0x120   :  { %v163_v25 = vpack.c.bf16 %v162_v23, %v162_v23 }
 0x122   :  { %365 = vmatmul.mubr.bf16.vlgmr.msra.gmra.mrb[0].mxu1 %v163_v25 }
 0x1f5   :  { %v269_v27 = vpop.f32.mrb[0].mxu1 }
 0x1f6   :  { %v270_v28 = vadd.f32 %v301_v26, %v269_v27  ;;  %v366_v29 = vpop.f32.mrb[1].mxu1 }
 0x1f7   :  { %v272_v30 = vpop.f32.mrb[2].mxu1 }
 0x1f8   :  { %275 = vst [vmem:[#allocation7] sm:$0xff] %v270_v28  ;;  %v367_v31 = vpop.f32.mrb[3].mxu1 }
 0x1f9   :  { %446 = shalt.err (!%p443_p6)
}
 0x1fa   :  { %s447_s4 = scalar_lea.hbm %s550_s5, 128 }
 0x1fb   :  { %p448_p7 = scmp.ne.s32.totalorder %s550_s5, %s447_s4  ;;  %p451_p8 = scmp.lt.u32.totalorder %s447_s4, %s550_s5 }
 0x1fd   :  { %p453_p9 = pnand %p451_p8, %p448_p7 }
 0x1ff   :  { %456 = shalt.err (!%p453_p9)
}
 0x200   :  { %285 = dma.vmem_to_hbm [thread:$0]  %s283_s23, 128, %s550_s5, [#allocation4]  }
 0x201   :  { %461 = dma.done.wait [#allocation4], 128  }
 0x202   :  { %462 = vsyncadd [#allocation4], 4294967168 }
 0x203   :  { %289 = vsyncpa [#allocation3], 1 }
 0x204   :  { %290 = vsyncpa [#allocation6], 1 }
 0x205   :  { %291 = vsyncpa [#allocation4], 1 }

// kernel: decoder_forward.1
= control target key start
LH: loop header
LB: loop body
LE: loop exit
PB: predicated region body
PF: predicated region fallthrough
CT: control target
= control target key end

     0   :  { %10 = vsyncpa [#allocation3], 0  ;;  %s545_s0 = inlined_call_operand.vmem [shape: bf16[8,128], index: 0, kind: input, shape index: {}]   ;;  %s546_s1 = inlined_call_operand.hbm [shape: bf16[128,128], index: 1, kind: input, shape index: {}]   ;;  %s547_s2 = inlined_call_operand.vmem [shape: f32[1,128], index: 2, kind: input, shape index: {}]   ;;  %s548_s3 = inlined_call_operand.hbm [shape: bf16[128,128], index: 3, kind: input, shape index: {}]   ;;  %s549_s4 = inlined_call_operand.vmem [shape: f32[1,128], index: 4, kind: input, shape index: {}]   ;;  %s550_s5 = inlined_call_operand.hbm [shape: f32[8,128], index: 5, kind: output, shape index: {}]  }
   0x1   :  { %11 = vsyncpa [#allocation6], 0 }
   0x2   :  { %12 = vsyncpa [#allocation4], 0  ;;  %s463_s18 = smov [#allocation2]   ;;  %s391_s22 = scalar_lea.hbm %s546_s1, 1024 }
   0x3   :  { %s20_s19 = sshll.u32 %s463_s18, 4  ;;  %p392_p0 = scmp.ne.s32.totalorder %s546_s1, %s391_s22  ;;  %s21_s19 = int_to_ptr.vmem [resolvable:$true] %s20_s19 }
   0x4   :  { %p395_p1 = scmp.lt.u32.totalorder %s391_s22, %s546_s1 }
   0x6   :  { %p397_p2 = pnand %p395_p1, %p392_p0 }
   0x8   :  { %400 = shalt.err (!%p397_p2)
}
   0x9   :  { %s401_s27 = scalar_lea.vmem %s21_s19, 1024  ;;  %p406_p4 = scmp.lt.s32.totalorder %s21_s19, %s21_s19 }
   0xa   :  { %p402_p3 = scmp.ne.s32.totalorder %s21_s19, %s401_s27  ;;  %p407_p5 = scmp.lt.s32.totalorder %s401_s27, %s401_s27 }
   0xc   :  { %p408_p6 = por %p407_p5, %p406_p4 }
   0xe   :  { %p409_p7 = pnand %p408_p6, %p402_p3 }
  0x10   :  { %412 = shalt.err (!%p409_p7)
}
  0x11   :  { %s464_s28 = smov 64   ;;  %s465_s29 = smov 4  }
  0x12   :  { %26 = dma.hbm_to_vmem [thread:$0]  %s546_s1, 1024, %s21_s19, [#allocation3], %s464_s28, %s464_s28, %s465_s29  }
  0x13   :  { %s466_s7 = smov [#allocation5]   ;;  %s413_s11 = scalar_lea.hbm %s548_s3, 1024 }
  0x14   :  { %s34_s8 = sshll.u32 %s466_s7, 4  ;;  %p414_p8 = scmp.ne.s32.totalorder %s548_s3, %s413_s11  ;;  %s35_s8 = int_to_ptr.vmem [resolvable:$true] %s34_s8 }
  0x15   :  { %p417_p9 = scmp.lt.u32.totalorder %s413_s11, %s548_s3 }
  0x17   :  { %p419_p10 = pnand %p417_p9, %p414_p8 }
  0x19   :  { %422 = shalt.err (!%p419_p10)
}
  0x1a   :  { %s423_s16 = scalar_lea.vmem %s35_s8, 1024  ;;  %p428_p12 = scmp.lt.s32.totalorder %s35_s8, %s35_s8 }
  0x1b   :  { %p424_p11 = scmp.ne.s32.totalorder %s35_s8, %s423_s16  ;;  %p429_p13 = scmp.lt.s32.totalorder %s423_s16, %s423_s16 }
  0x1d   :  { %p430_p0 = por %p429_p13, %p428_p12 }
  0x1f   :  { %p431_p1 = pnand %p430_p0, %p424_p11 }
  0x21   :  { %434 = shalt.err (!%p431_p1)
}
  0x22   :  { %40 = dma.hbm_to_vmem [thread:$0]  %s548_s3, 1024, %s35_s8, [#allocation6], %s464_s28, %s464_s28, %s465_s29  }
  0x23   :  { %457 = dma.done.wait [#allocation3], 1024  }
  0x24   :  { %458 = vsyncadd [#allocation3], 4294966272 }
  0x25   :  { %459 = dma.done.wait [#allocation6], 1024  }
  0x26   :  { %460 = vsyncadd [#allocation6], 4294966272  ;;  %v467_v0 = vmov 0.0   ;;  %vm468_vm0 = vmmov 0   ;;  %v375_v1 = vld [vmem:[#allocation2] sm:$0xff]   ;;  %v376_v2 = vld [vmem:[#allocation2 + $0x8] sm:$0xff]  }
  0x27   :  { %328 = vmatprep.subr.bf16.mxu0 %v467_v0  ;;  %344 = vmatprep.mubr.msk.bf16.mxu0 %vm468_vm0, %v467_v0  ;;  %v377_v3 = vld [vmem:[#allocation2 + $0x10] sm:$0xff]   ;;  %v383_v4 = vld [vmem:[#allocation5] sm:$0xff]   ;;  %v378_v5 = vld [vmem:[#allocation2 + $0x18] sm:$0xff]   ;;  %s469_s22 = smov [#allocation7]  }
  0x28   :  { %348 = vmatprep.subr.bf16.mxu1 %v467_v0  ;;  %364 = vmatprep.mubr.msk.bf16.mxu1 %vm468_vm0, %v467_v0  ;;  %v384_v6 = vld [vmem:[#allocation5 + $0x8] sm:$0xff]   ;;  %v379_v7 = vld [vmem:[#allocation2 + $0x20] sm:$0xff]   ;;  %v385_v8 = vld [vmem:[#allocation5 + $0x10] sm:$0xff]   ;;  %s282_s23 = sshll.u32 %s469_s22, 4  ;;  %s283_s23 = int_to_ptr.vmem [resolvable:$true] %s282_s23 }
  0x29   :  { %329 = vmatpush3.bf16.msra.mxu0 %v375_v1  ;;  %349 = vmatpush3.bf16.msra.mxu1 %v383_v4  ;;  %v380_v9 = vld [vmem:[#allocation2 + $0x28] sm:$0xff]   ;;  %v386_v10 = vld [vmem:[#allocation5 + $0x18] sm:$0xff]   ;;  %v381_v11 = vld [vmem:[#allocation2 + $0x30] sm:$0xff]   ;;  %p440_p3 = scmp.lt.s32.totalorder %s283_s23, %s283_s23 }
  0x2a   :  { %330 = vmatprep.subr.bf16.mxu0 %v467_v0  ;;  %350 = vmatprep.subr.bf16.mxu1 %v467_v0  ;;  %v387_v12 = vld [vmem:[#allocation5 + $0x20] sm:$0xff]   ;;  %v382_v13 = vld [vmem:[#allocation2 + $0x38] sm:$0xff]   ;;  %v388_v14 = vld [vmem:[#allocation5 + $0x28] sm:$0xff]  }
  0x2b   :  { %v50_v15 = vld [vmem:[%s545_s0] sm:$0xf]  ;;  %v389_v16 = vld [vmem:[#allocation5 + $0x30] sm:$0xff]  }
  0x2c   :  { %v390_v17 = vld [vmem:[#allocation5 + $0x38] sm:$0xff]  }
  0x2d   :  { %331 = vmatpush3.bf16.msra.mxu0 %v376_v2  ;;  %351 = vmatpush3.bf16.msra.mxu1 %v384_v6  ;;  %v292_v18 = vld [vmem:[%s547_s2] ss:$0 sm:$0xff]  ;;  %s435_s2 = scalar_lea.vmem %s283_s23, 128 }
  0x2e   :  { %332 = vmatprep.subr.bf16.mxu0 %v467_v0  ;;  %352 = vmatprep.subr.bf16.mxu1 %v467_v0  ;;  %v301_v26 = vld [vmem:[%s549_s4] ss:$0 sm:$0xff]  ;;  %p436_p2 = scmp.ne.s32.totalorder %s283_s23, %s435_s2  ;;  %p441_p4 = scmp.lt.s32.totalorder %s435_s2, %s435_s2 }
  0x30   :  { %p442_p5 = por %p441_p4, %p440_p3 }
  0x31   :  { %333 = vmatpush3.bf16.msra.mxu0 %v377_v3  ;;  %353 = vmatpush3.bf16.msra.mxu1 %v385_v8 }
  0x32   :  { %334 = vmatprep.subr.bf16.mxu0 %v467_v0  ;;  %354 = vmatprep.subr.bf16.mxu1 %v467_v0  ;;  %p443_p6 = pnand %p442_p5, %p436_p2 }
  0x35   :  { %335 = vmatpush3.bf16.msra.mxu0 %v378_v5  ;;  %355 = vmatpush3.bf16.msra.mxu1 %v386_v10 }
  0x36   :  { %336 = vmatprep.subr.bf16.mxu0 %v467_v0  ;;  %356 = vmatprep.subr.bf16.mxu1 %v467_v0 }
  0x39   :  { %337 = vmatpush3.bf16.msra.mxu0 %v379_v7  ;;  %357 = vmatpush3.bf16.msra.mxu1 %v387_v12 }
  0x3a   :  { %338 = vmatprep.subr.bf16.mxu0 %v467_v0  ;;  %358 = vmatprep.subr.bf16.mxu1 %v467_v0 }
  0x3d   :  { %339 = vmatpush3.bf16.msra.mxu0 %v380_v9  ;;  %359 = vmatpush3.bf16.msra.mxu1 %v388_v14 }
  0x3e   :  { %340 = vmatprep.subr.bf16.mxu0 %v467_v0  ;;  %360 = vmatprep.subr.bf16.mxu1 %v467_v0 }
  0x41   :  { %341 = vmatpush3.bf16.msra.mxu0 %v381_v11  ;;  %361 = vmatpush3.bf16.msra.mxu1 %v389_v16 }
  0x42   :  { %342 = vmatprep.subr.bf16.mxu0 %v467_v0  ;;  %362 = vmatprep.subr.bf16.mxu1 %v467_v0 }
  0x45   :  { %343 = vmatpush3.bf16.msra.mxu0 %v382_v13  ;;  %363 = vmatpush3.bf16.msra.mxu1 %v390_v17 }
  0x48   :  { %345 = vmatmul.mubr.bf16.vlgmr.msra.gmra.mrb[0].mxu0 %v50_v15 }
 0x11b   :  { %v156_v19 = vpop.f32.mrb[0].mxu0 }
 0x11c   :  { %v157_v20 = vadd.f32 %v292_v18, %v156_v19  ;;  %v346_v21 = vpop.f32.mrb[1].mxu0 }
 0x11d   :  { %v159_v22 = vpop.f32.mrb[2].mxu0 }
 0x11e   :  { %v162_v23 = vmax.f32 %v157_v20, 0.0  ;;  %v347_v24 = vpop.f32.mrb[3].mxu0 }
 0x120   :  { %v163_v25 = vpack.c.bf16 %v162_v23, %v162_v23 }
 0x122   :  { %365 = vmatmul.mubr.bf16.vlgmr.msra.gmra.mrb[0].mxu1 %v163_v25 }
 0x1f5   :  { %v269_v27 = vpop.f32.mrb[0].mxu1 }
 0x1f6   :  { %v270_v28 = vadd.f32 %v301_v26, %v269_v27  ;;  %v366_v29 = vpop.f32.mrb[1].mxu1 }
 0x1f7   :  { %v272_v30 = vpop.f32.mrb[2].mxu1 }
 0x1f8   :  { %275 = vst [vmem:[#allocation7] sm:$0xff] %v270_v28  ;;  %v367_v31 = vpop.f32.mrb[3].mxu1 }
 0x1f9   :  { %446 = shalt.err (!%p443_p6)
}
 0x1fa   :  { %s447_s4 = scalar_lea.hbm %s550_s5, 128 }
 0x1fb   :  { %p448_p7 = scmp.ne.s32.totalorder %s550_s5, %s447_s4  ;;  %p451_p8 = scmp.lt.u32.totalorder %s447_s4, %s550_s5 }
 0x1fd   :  { %p453_p9 = pnand %p451_p8, %p448_p7 }
 0x1ff   :  { %456 = shalt.err (!%p453_p9)
}
 0x200   :  { %285 = dma.vmem_to_hbm [thread:$0]  %s283_s23, 128, %s550_s5, [#allocation4]  }
 0x201   :  { %461 = dma.done.wait [#allocation4], 128  }
 0x202   :  { %462 = vsyncadd [#allocation4], 4294967168 }
 0x203   :  { %289 = vsyncpa [#allocation3], 1 }
 0x204   :  { %290 = vsyncpa [#allocation6], 1 }
 0x205   :  { %291 = vsyncpa [#allocation4], 1 }

</bundles_post_ra>
